<compile_context>
chip_gen: v6e
topology: v6e:2x2x1
jax: 0.10.0
libtpu: 0.0.40
codegen_flags: <defaults>
</compile_context>

<pallas_src>
import jax
import jax.numpy as jnp
from jax.experimental import pallas as pl
from jax.experimental.pallas import tpu as pltpu


def critic_kernel(s_ref, a_ref, w1s_ref, w1a_ref, b1_ref,
                  w2_ref, b2_ref, w3_ref, b3_ref, o_ref):
    # Dot-operand dtype follows the stored weight dtype (bf16 by default);
    # bias-add / ReLU / head math stays f32.
    dot_dt = w1s_ref.dtype

    # Layer 1: split-input matmul replaces concat([state, action]) @ W1.
    h1 = (jnp.dot(s_ref[...].astype(dot_dt), w1s_ref[...],
                  preferred_element_type=jnp.float32)
          + jnp.dot(a_ref[...].astype(dot_dt), w1a_ref[...],
                    preferred_element_type=jnp.float32)
          + b1_ref[...])
    h1 = jnp.maximum(h1, 0.0)

    # Layer 2 (dominant matmul): bf16 operands, f32 accumulate.
    h2 = jnp.dot(h1.astype(w2_ref.dtype), w2_ref[...],
                 preferred_element_type=jnp.float32) + b2_ref[...]
    h2 = jnp.maximum(h2, 0.0)

    # Layer 3 (out_features == 1): VPU multiply + lane reduce instead of an
    # N=1 MXU matmul.  b3 comes in as an SMEM scalar.
    q = jnp.sum(h2 * w3_ref[...], axis=-1, keepdims=True) + b3_ref[0, 0]
    o_ref[...] = q.astype(o_ref.dtype)


def _round_up(x, m):
    return ((x + m - 1) // m) * m


def critic_forward(state, action, params, *, tb_max=1024):
    """Fused 3-layer critic MLP via a single batch-gridded Pallas kernel."""
    w1s, w1a, b1, w2, b2, w3_row, b3 = params
    B, S = state.shape
    A = action.shape[1]
    H = w2.shape[1]

    # Batch tile: multiple of 8 sublanes; capped at tb_max (footprint ~4 MiB at
    # 1024, fine for every generation's scoped VMEM default); sized so the grid
    # has >= 2 steps whenever B allows it, so v7x's second TensorCore is used.
    TB = min(tb_max, max(8, _round_up((B + 1) // 2, 8)))
    nb = pl.cdiv(B, TB)

    grid_spec = pltpu.PrefetchScalarGridSpec(
        num_scalar_prefetch=0,
        grid=(nb,),
        in_specs=[
            pl.BlockSpec((TB, S), lambda i: (i, 0)),   # state tile (pipelined)
            pl.BlockSpec((TB, A), lambda i: (i, 0)),   # action tile (pipelined)
            pl.BlockSpec((S, H), lambda i: (0, 0)),    # W1_s (VMEM-resident, bf16)
            pl.BlockSpec((A, H), lambda i: (0, 0)),    # W1_a (bf16)
            pl.BlockSpec((1, H), lambda i: (0, 0)),    # b1 (f32)
            pl.BlockSpec((H, H), lambda i: (0, 0)),    # W2 (bf16)
            pl.BlockSpec((1, H), lambda i: (0, 0)),    # b2 (f32)
            pl.BlockSpec((1, H), lambda i: (0, 0)),    # W3 as a (1, H) f32 lane row
            pl.BlockSpec(memory_space=pltpu.SMEM),     # b3 scalar in SMEM
        ],
        out_specs=pl.BlockSpec((TB, 1), lambda i: (i, 0)),
    )

    return pl.pallas_call(
        critic_kernel,
        out_shape=jax.ShapeDtypeStruct((B, 1), jnp.float32),
        grid_spec=grid_spec,
        compiler_params=pltpu.CompilerParams(
            dimension_semantics=("parallel",)),
    )(state, action, w1s, w1a, b1, w2, b2, w3_row, b3)


def init_params(key, state_dim, action_dim, hidden_size,
                dot_dtype=jnp.bfloat16):
    """Deterministic init mimicking nn.Linear's U(-1/sqrt(fan_in), 1/sqrt(fan_in)).

    Weights are stored pre-transposed to (in, out); W1 is split into its
    state / action row-blocks (stored in `dot_dtype` for the MXU), W3 is kept
    as a (1, H) f32 row for the VPU head, biases stay f32.
    """
    in_dim = state_dim + action_dim

    def linear(k, fan_in, fan_out):
        kw, kb = jax.random.split(k)
        bound = 1.0 / jnp.sqrt(jnp.float32(fan_in))
        w = jax.random.uniform(kw, (fan_in, fan_out), jnp.float32, -bound, bound)
        b = jax.random.uniform(kb, (1, fan_out), jnp.float32, -bound, bound)
        return w, b

    k1, k2, k3 = jax.random.split(key, 3)
    w1, b1 = linear(k1, in_dim, hidden_size)
    w2, b2 = linear(k2, hidden_size, hidden_size)
    w3, b3 = linear(k3, hidden_size, 1)

    w1s = w1[:state_dim].astype(dot_dtype)
    w1a = w1[state_dim:].astype(dot_dtype)
    w2 = w2.astype(dot_dtype)
    w3_row = w3.T                                  # (1, H) f32 for the VPU head
    return (w1s, w1a, b1, w2, b2, w3_row, b3)


def critic_ref(state, action, params):
    """Pure-JAX reference (f32 HIGHEST matmuls on the stored weights)."""
    w1s, w1a, b1, w2, b2, w3_row, b3 = params
    x = jnp.concatenate([state, action], axis=-1)
    w1 = jnp.concatenate([w1s.astype(jnp.float32), w1a.astype(jnp.float32)], axis=0)
    hp = jax.lax.Precision.HIGHEST
    h1 = jnp.maximum(jnp.dot(x, w1, precision=hp) + b1, 0.0)
    h2 = jnp.maximum(jnp.dot(h1, w2.astype(jnp.float32), precision=hp) + b2, 0.0)
    return jnp.dot(h2, w3_row.T, precision=hp) + b3


if __name__ == "__main__":
    # Walker2D-like shapes: state_dim=17, action_dim=6, hidden=256 (module
    # default), batch=8.
    STATE_DIM, ACTION_DIM, HIDDEN, BATCH = 17, 6, 256, 8

    key = jax.random.PRNGKey(0)
    k_params, k_state, k_action = jax.random.split(key, 3)

    params = init_params(k_params, STATE_DIM, ACTION_DIM, HIDDEN)
    state = jax.random.normal(k_state, (BATCH, STATE_DIM), jnp.float32)
    action = jax.random.normal(k_action, (BATCH, ACTION_DIM), jnp.float32)

    q = jax.block_until_ready(critic_forward(state, action, params))
    q_ref = critic_ref(state, action, params)
    assert q.shape == (BATCH, 1), q.shape
    # bf16 MXU operands => compare against the f32 reference with a tolerance
    # that covers bf16 activation rounding (expected abs error ~2e-3 here).
    assert jnp.allclose(q, q_ref, atol=2e-2, rtol=2e-2), (q, q_ref)

    # Second check: a batch large enough to exercise a multi-step grid
    # (TB=32, nb=2) with VMEM-resident weights across steps.
    B2 = 64
    k_s2, k_a2 = jax.random.split(jax.random.PRNGKey(1))
    state2 = jax.random.normal(k_s2, (B2, STATE_DIM), jnp.float32)
    action2 = jax.random.normal(k_a2, (B2, ACTION_DIM), jnp.float32)
    q2 = jax.block_until_ready(critic_forward(state2, action2, params))
    q2_ref = critic_ref(state2, action2, params)
    assert q2.shape == (B2, 1), q2.shape
    assert jnp.allclose(q2, q2_ref, atol=2e-2, rtol=2e-2), (q2, q2_ref)

    print("KERNEL_OK")
</pallas_src>

<mosaic_0001>
module attributes {stable_mosaic.version = 11 : i64} {
  func.func @critic_kernel(%arg0: i32, %arg1: memref<8x17xf32, #tpu.memory_space<vmem>>, %arg2: memref<8x6xf32, #tpu.memory_space<vmem>>, %arg3: memref<17x256xbf16, #tpu.memory_space<vmem>>, %arg4: memref<6x256xbf16, #tpu.memory_space<vmem>>, %arg5: memref<1x256xf32, #tpu.memory_space<vmem>>, %arg6: memref<256x256xbf16, #tpu.memory_space<vmem>>, %arg7: memref<1x256xf32, #tpu.memory_space<vmem>>, %arg8: memref<1x256xf32, #tpu.memory_space<vmem>>, %arg9: memref<1x1xf32, #tpu.memory_space<smem>>, %arg10: memref<8x1xf32, #tpu.memory_space<vmem>>) attributes {dimension_semantics = [#tpu.dimension_semantics<parallel>], iteration_bounds = array<i64: 1>, scalar_prefetch = 0 : i64, scratch_operands = 0 : i64, tpu.core_type = #tpu.core_type<tc>, window_params = [{transform_indices = @transform_0, window_bounds = array<i64: 8, 17>}, {transform_indices = @transform_1, window_bounds = array<i64: 8, 6>}, {pipeline_mode = #tpu.pipeline_mode<synchronous>, transform_indices = @transform_2, window_bounds = array<i64: 17, 256>}, {pipeline_mode = #tpu.pipeline_mode<synchronous>, transform_indices = @transform_3, window_bounds = array<i64: 6, 256>}, {pipeline_mode = #tpu.pipeline_mode<synchronous>, transform_indices = @transform_4, window_bounds = array<i64: 1, 256>}, {pipeline_mode = #tpu.pipeline_mode<synchronous>, transform_indices = @transform_5, window_bounds = array<i64: 256, 256>}, {pipeline_mode = #tpu.pipeline_mode<synchronous>, transform_indices = @transform_6, window_bounds = array<i64: 1, 256>}, {pipeline_mode = #tpu.pipeline_mode<synchronous>, transform_indices = @transform_7, window_bounds = array<i64: 1, 256>}, {transform_indices = @transform_8, window_bounds = array<i64: 1, 1>}, {transform_indices = @transform_9, window_bounds = array<i64: 8, 1>}]} {
    %c0 = arith.constant 0 : index
    %c0_0 = arith.constant 0 : index
    %0 = vector.load %arg1[%c0, %c0_0] : memref<8x17xf32, #tpu.memory_space<vmem>>, vector<8x17xf32>
    %1 = arith.truncf %0 : vector<8x17xf32> to vector<8x17xbf16>
    %c0_1 = arith.constant 0 : index
    %c0_2 = arith.constant 0 : index
    %2 = vector.load %arg3[%c0_1, %c0_2] : memref<17x256xbf16, #tpu.memory_space<vmem>>, vector<17x256xbf16>
    %cst = arith.constant dense<0.000000e+00> : vector<8x256xf32>
    %3 = tpu.matmul %1, %2, %cst {dimension_numbers = #tpu.dot_dimension_numbers<[1], [0], [0], [1], [0, 0, 1, 1], [], []>} : vector<8x17xbf16>, vector<17x256xbf16>, vector<8x256xf32> -> vector<8x256xf32>
    %c0_3 = arith.constant 0 : index
    %c0_4 = arith.constant 0 : index
    %4 = vector.load %arg2[%c0_3, %c0_4] : memref<8x6xf32, #tpu.memory_space<vmem>>, vector<8x6xf32>
    %5 = arith.truncf %4 : vector<8x6xf32> to vector<8x6xbf16>
    %c0_5 = arith.constant 0 : index
    %c0_6 = arith.constant 0 : index
    %6 = vector.load %arg4[%c0_5, %c0_6] : memref<6x256xbf16, #tpu.memory_space<vmem>>, vector<6x256xbf16>
    %cst_7 = arith.constant dense<0.000000e+00> : vector<8x256xf32>
    %7 = tpu.matmul %5, %6, %cst_7 {dimension_numbers = #tpu.dot_dimension_numbers<[1], [0], [0], [1], [0, 0, 1, 1], [], []>} : vector<8x6xbf16>, vector<6x256xbf16>, vector<8x256xf32> -> vector<8x256xf32>
    %8 = arith.addf %3, %7 : vector<8x256xf32>
    %c0_8 = arith.constant 0 : index
    %c0_9 = arith.constant 0 : index
    %9 = vector.load %arg5[%c0_8, %c0_9] : memref<1x256xf32, #tpu.memory_space<vmem>>, vector<1x256xf32>
    %10 = vector.broadcast %9 : vector<1x256xf32> to vector<8x256xf32>
    %11 = arith.addf %8, %10 : vector<8x256xf32>
    %cst_10 = arith.constant 0.000000e+00 : f32
    %12 = vector.broadcast %cst_10 : f32 to vector<8x256xf32>
    %13 = arith.maximumf %11, %12 : vector<8x256xf32>
    %14 = arith.truncf %13 : vector<8x256xf32> to vector<8x256xbf16>
    %c0_11 = arith.constant 0 : index
    %c0_12 = arith.constant 0 : index
    %15 = vector.load %arg6[%c0_11, %c0_12] : memref<256x256xbf16, #tpu.memory_space<vmem>>, vector<256x256xbf16>
    %cst_13 = arith.constant dense<0.000000e+00> : vector<8x256xf32>
    %16 = tpu.matmul %14, %15, %cst_13 {dimension_numbers = #tpu.dot_dimension_numbers<[1], [0], [0], [1], [0, 0, 1, 1], [], []>} : vector<8x256xbf16>, vector<256x256xbf16>, vector<8x256xf32> -> vector<8x256xf32>
    %c0_14 = arith.constant 0 : index
    %c0_15 = arith.constant 0 : index
    %17 = vector.load %arg7[%c0_14, %c0_15] : memref<1x256xf32, #tpu.memory_space<vmem>>, vector<1x256xf32>
    %18 = vector.broadcast %17 : vector<1x256xf32> to vector<8x256xf32>
    %19 = arith.addf %16, %18 : vector<8x256xf32>
    %cst_16 = arith.constant 0.000000e+00 : f32
    %20 = vector.broadcast %cst_16 : f32 to vector<8x256xf32>
    %21 = arith.maximumf %19, %20 : vector<8x256xf32>
    %c0_17 = arith.constant 0 : index
    %c0_18 = arith.constant 0 : index
    %22 = vector.load %arg8[%c0_17, %c0_18] : memref<1x256xf32, #tpu.memory_space<vmem>>, vector<1x256xf32>
    %23 = vector.broadcast %22 : vector<1x256xf32> to vector<8x256xf32>
    %24 = arith.mulf %21, %23 : vector<8x256xf32>
    %cst_19 = arith.constant dense<0.000000e+00> : vector<8xf32>
    %25 = vector.multi_reduction <add>, %24, %cst_19 [1] : vector<8x256xf32> to vector<8xf32>
    %26 = vector.shape_cast %25 : vector<8xf32> to vector<8x1xf32>
    %c0_20 = arith.constant 0 : index
    %c0_21 = arith.constant 0 : index
    %27 = memref.load %arg9[%c0_20, %c0_21] : memref<1x1xf32, #tpu.memory_space<smem>>
    %28 = vector.broadcast %27 : f32 to vector<8x1xf32>
    %29 = arith.addf %26, %28 : vector<8x1xf32>
    %c0_22 = arith.constant 0 : index
    %c0_23 = arith.constant 0 : index
    %30 = vector.load %arg10[%c0_22, %c0_23] : memref<8x1xf32, #tpu.memory_space<vmem>>, vector<8x1xf32>
    tpu.vector_store %arg10[%c0_22, %c0_23], %29 {strides = array<i32>} : memref<8x1xf32, #tpu.memory_space<vmem>>, vector<8x1xf32>,
    return
  }
  func.func @transform_0(%arg0: i32) -> (i32, i32) {
    %c0_i32 = arith.constant 0 : i32
    %c0_i32_0 = arith.constant 0 : i32
    return %arg0, %c0_i32 : i32, i32
  }
  func.func @transform_1(%arg0: i32) -> (i32, i32) {
    %c0_i32 = arith.constant 0 : i32
    %c0_i32_0 = arith.constant 0 : i32
    return %arg0, %c0_i32 : i32, i32
  }
  func.func @transform_2(%arg0: i32) -> (i32, i32) {
    %c0_i32 = arith.constant 0 : i32
    %c0_i32_0 = arith.constant 0 : i32
    %c0_i32_1 = arith.constant 0 : i32
    return %c0_i32, %c0_i32_0 : i32, i32
  }
  func.func @transform_3(%arg0: i32) -> (i32, i32) {
    %c0_i32 = arith.constant 0 : i32
    %c0_i32_0 = arith.constant 0 : i32
    %c0_i32_1 = arith.constant 0 : i32
    return %c0_i32, %c0_i32_0 : i32, i32
  }
  func.func @transform_4(%arg0: i32) -> (i32, i32) {
    %c0_i32 = arith.constant 0 : i32
    %c0_i32_0 = arith.constant 0 : i32
    %c0_i32_1 = arith.constant 0 : i32
    return %c0_i32, %c0_i32_0 : i32, i32
  }
  func.func @transform_5(%arg0: i32) -> (i32, i32) {
    %c0_i32 = arith.constant 0 : i32
    %c0_i32_0 = arith.constant 0 : i32
    %c0_i32_1 = arith.constant 0 : i32
    return %c0_i32, %c0_i32_0 : i32, i32
  }
  func.func @transform_6(%arg0: i32) -> (i32, i32) {
    %c0_i32 = arith.constant 0 : i32
    %c0_i32_0 = arith.constant 0 : i32
    %c0_i32_1 = arith.constant 0 : i32
    return %c0_i32, %c0_i32_0 : i32, i32
  }
  func.func @transform_7(%arg0: i32) -> (i32, i32) {
    %c0_i32 = arith.constant 0 : i32
    %c0_i32_0 = arith.constant 0 : i32
    %c0_i32_1 = arith.constant 0 : i32
    return %c0_i32, %c0_i32_0 : i32, i32
  }
  func.func @transform_8(%arg0: i32) -> (i32, i32) {
    %c0_i32 = arith.constant 0 : i32
    %c0_i32_0 = arith.constant 0 : i32
    %c0_i32_1 = arith.constant 0 : i32
    return %c0_i32, %c0_i32_0 : i32, i32
  }
  func.func @transform_9(%arg0: i32) -> (i32, i32) {
    %c0_i32 = arith.constant 0 : i32
    %c0_i32_0 = arith.constant 0 : i32
    return %arg0, %c0_i32 : i32, i32
  }
}

</mosaic_0001>

<bundles_post_ra>
// kernel: tpu_custom_call.1
= control target key start
LH: loop header
LB: loop body
LE: loop exit
PB: predicated region body
PF: predicated region fallthrough
CT: control target
= control target key end

     0   :  { %15 = vsyncpa [#allocation4], 0  ;;  %s822_s0 = inlined_call_operand.hbm [shape: f32[8,17], index: 0, kind: input, shape index: {}]   ;;  %s823_s1 = inlined_call_operand.hbm [shape: f32[8,6], index: 1, kind: input, shape index: {}]   ;;  %s824_s2 = inlined_call_operand.hbm [shape: bf16[17,256], index: 2, kind: input, shape index: {}]   ;;  %s825_s3 = inlined_call_operand.hbm [shape: bf16[6,256], index: 3, kind: input, shape index: {}]   ;;  %s826_s4 = inlined_call_operand.vmem [shape: f32[1,256], index: 4, kind: input, shape index: {}]   ;;  %s827_s5 = inlined_call_operand.hbm [shape: bf16[256,256], index: 5, kind: input, shape index: {}]   ;;  %s828_s6 = inlined_call_operand.vmem [shape: f32[1,256], index: 6, kind: input, shape index: {}]   ;;  %s829_s7 = inlined_call_operand.vmem [shape: f32[1,256], index: 7, kind: input, shape index: {}]   ;;  %s830_s8 = inlined_call_operand.<no memory space> [shape: f32[1,1], index: 8, kind: input, shape index: {}]   ;;  %s831_s9 = inlined_call_operand.vmem [shape: f32[8,1], index: 9, kind: output, shape index: {}]  }
   0x1   :  { %16 = vsyncpa [#allocation6], 0 }
   0x2   :  { %17 = vsyncpa [#allocation9], 0  ;;  %s734_s30 = smov [#allocation5]   ;;  %s735_s11 = smov [#allocation8]  }
   0x3   :  { %s34_s10 = sshll.u32 %s734_s30, 4  ;;  %s56_s12 = sshll.u32 %s735_s11, 4  ;;  %s35_s10 = int_to_ptr.vmem [resolvable:$true] %s34_s10  ;;  %s57_s12 = int_to_ptr.vmem [resolvable:$true] %s56_s12 }
   0x4   :  { %s636_s13 = scalar_lea.vmem %s35_s10, 128  ;;  %p641_p1 = scmp.lt.s32.totalorder %s35_s10, %s35_s10 }
   0x5   :  { %p637_p0 = scmp.ne.s32.totalorder %s35_s10, %s636_s13  ;;  %p642_p2 = scmp.lt.s32.totalorder %s636_s13, %s636_s13 }
   0x7   :  { %p643_p3 = por %p642_p2, %p641_p1 }
   0x9   :  { %p644_p4 = pnand %p643_p3, %p637_p0 }
   0xb   :  { %647 = shalt.err (!%p644_p4)
}
   0xc   :  { %37 = dma.hbm_to_vmem [thread:$0]  %s823_s1, 128, %s35_s10, [#allocation6]  }
   0xd   :  { %s656_s16 = scalar_lea.vmem %s57_s12, 128  ;;  %p661_p6 = scmp.lt.s32.totalorder %s57_s12, %s57_s12 }
   0xe   :  { %p657_p5 = scmp.ne.s32.totalorder %s57_s12, %s656_s16  ;;  %p662_p7 = scmp.lt.s32.totalorder %s656_s16, %s656_s16 }
  0x10   :  { %p663_p8 = por %p662_p7, %p661_p6 }
  0x12   :  { %p664_p9 = pnand %p663_p8, %p657_p5 }
  0x14   :  { %667 = shalt.err (!%p664_p9)
}
  0x15   :  { %59 = dma.hbm_to_vmem [thread:$0]  %s825_s3, 128, %s57_s12, [#allocation9]  }
  0x16   :  { %s736_s19 = smov [#allocation3]   ;;  %s737_s21 = smov [#allocation7]  }
  0x17   :  { %s24_s20 = sshll.u32 %s736_s19, 4  ;;  %s43_s22 = sshll.u32 %s737_s21, 4  ;;  %s25_s20 = int_to_ptr.vmem [resolvable:$true] %s24_s20  ;;  %s44_s22 = int_to_ptr.vmem [resolvable:$true] %s43_s22 }
  0x18   :  { %s676_s23 = scalar_lea.vmem %s25_s20, 128  ;;  %p681_p11 = scmp.lt.s32.totalorder %s25_s20, %s25_s20 }
  0x19   :  { %p677_p10 = scmp.ne.s32.totalorder %s25_s20, %s676_s23  ;;  %p682_p12 = scmp.lt.s32.totalorder %s676_s23, %s676_s23 }
  0x1b   :  { %p683_p13 = por %p682_p12, %p681_p11 }
  0x1d   :  { %p684_p0 = pnand %p683_p13, %p677_p10 }
  0x1f   :  { %687 = shalt.err (!%p684_p0)
}
  0x20   :  { %27 = dma.hbm_to_vmem [thread:$0]  %s822_s0, 128, %s25_s20, [#allocation4]  }
  0x21   :  { %s696_s25 = scalar_lea.vmem %s44_s22, 384  ;;  %p701_p2 = scmp.lt.s32.totalorder %s44_s22, %s44_s22 }
  0x22   :  { %p697_p1 = scmp.ne.s32.totalorder %s44_s22, %s696_s25  ;;  %p702_p3 = scmp.lt.s32.totalorder %s696_s25, %s696_s25 }
  0x24   :  { %p703_p4 = por %p702_p3, %p701_p2 }
  0x26   :  { %p704_p5 = pnand %p703_p4, %p697_p1 }
  0x28   :  { %707 = shalt.err (!%p704_p5)
}
  0x29   :  { %s738_s3 = smov 128   ;;  %s739_s26 = smov 8  }
  0x2a   :  { %49 = dma.hbm_to_vmem [thread:$0]  %s824_s2, 384, %s44_s22, [#allocation6], %s738_s3, %s738_s3, %s739_s26  }
  0x2b   :  { %s740_s29 = smov [#allocation10]  }
  0x2c   :  { %s67_s30 = sshll.u32 %s740_s29, 4  ;;  %s68_s30 = int_to_ptr.vmem [resolvable:$true] %s67_s30 }
  0x2d   :  { %s716_s10 = scalar_lea.vmem %s68_s30, 4096  ;;  %p721_p7 = scmp.lt.s32.totalorder %s68_s30, %s68_s30 }
  0x2e   :  { %p717_p6 = scmp.ne.s32.totalorder %s68_s30, %s716_s10  ;;  %p722_p8 = scmp.lt.s32.totalorder %s716_s10, %s716_s10 }
  0x30   :  { %p723_p9 = por %p722_p8, %p721_p7 }
  0x32   :  { %p724_p10 = pnand %p723_p9, %p717_p6 }
  0x34   :  { %727 = shalt.err (!%p724_p10)
}
  0x35   :  { %73 = dma.hbm_to_vmem [thread:$0]  %s827_s5, 4096, %s68_s30, [#allocation9], %s738_s3, %s738_s3, %s739_s26  }
  0x36   :  { %728 = dma.done.wait [#allocation4], 128  }
  0x37   :  { %729 = vsyncadd [#allocation4], 4294967168 }
  0x38   :  { %730 = dma.done.wait [#allocation6], 512  }
  0x39   :  { %731 = vsyncadd [#allocation6], 4294966784 }
  0x3a   :  { %732 = dma.done.wait [#allocation9], 4224  }
  0x3b   :  { %733 = vsyncadd [#allocation9], 4294963072  ;;  %v741_v0 = vmov 0   ;;  %vm180_vm0 = vcmask 1040384   ;;  %v103_v1 = vld [vmem:[#allocation8] sm:$0x77]  ;;  %v232_v49 = vlaneseq }
  0x3c   :  { %152 = vmatprep.mubr.bf16.mxu1 %v741_v0  ;;  %vm113_vm1 = vcmask 1042432   ;;  %v100_v2 = vld [vmem:[#allocation7 + $0x10] sm:$0x11]  ;;  %v101_v3 = vld [vmem:[#allocation5] sm:$0xff]  ;;  %v525_v4 = vcombine.high %v103_v1, %v103_v1  ;;  %v524_v5 = vcombine.low %v103_v1, %v103_v1  ;;  %v182_v7 = vsel %vm180_vm0, 65535, %v741_v0 }
  0x3d   :  { %v530_v6 = vcombine.low %v100_v2, %v100_v2  ;;  %v531_v8 = vcombine.high %v100_v2, %v100_v2  ;;  %v102_v10 = vpack.c.bf16 %v101_v3, %v101_v3  ;;  %v580_v11 = vld [vmem:[#allocation10 + $0x74] ss:$8 sps:$4 sm:$0xff]   ;;  %v582_v12 = vld [vmem:[#allocation10 + $0x70] ss:$8 sps:$4 sm:$0xff]   ;;  %vm109_vm2 = vcmask 48128  }
  0x3e   :  { %526 = vmatprep.subr.msk.bf16.mxu1 %vm113_vm1, %v525_v4  ;;  %v115_v9 = vsel %vm113_vm1, %v524_v5, 0  ;;  %v583_v15 = vld [vmem:[#allocation10 + $0x64] ss:$8 sps:$4 sm:$0xff]   ;;  %452 = vmatprep.subr.bf16.mxu0 %v580_v11  ;;  %v585_v17 = vld [vmem:[#allocation10 + $0x60] ss:$8 sps:$4 sm:$0xff]   ;;  %v96_v20 = vld [vmem:[#allocation3] sm:$0xff] }
  0x3f   :  { %135 = vmatpush1.bf16.msra.mxu1 %v115_v9  ;;  %v184_v13 = vand.u32 %v530_v6, %v182_v7  ;;  %v187_v14 = vand.u32 %v531_v8, %v182_v7  ;;  %v579_v16 = vld [vmem:[#allocation7 + $0x4] ss:$8 sps:$4 sm:$0xff]   ;;  %453 = vmatpush1.bf16.msra.mxu0 %v582_v12  ;;  %v577_v18 = vld [vmem:[#allocation7] ss:$8 sps:$4 sm:$0xff]   ;;  %v586_v19 = vld [vmem:[#allocation10 + $0x54] ss:$8 sps:$4 sm:$0xff]   ;;  %v97_v22 = vpack.c.bf16 %v96_v20, %v96_v20 }
  0x40   :  { %454 = vmatprep.subr.bf16.mxu0 %v583_v15  ;;  %v588_v21 = vld [vmem:[#allocation10 + $0x50] ss:$8 sps:$4 sm:$0xff]   ;;  %v589_v23 = vld [vmem:[#allocation10 + $0x44] ss:$8 sps:$4 sm:$0xff]   ;;  %vm176_vm3 = vcmask 138240   ;;  %v233_v50 = vshrl.u32 %v232_v49, 7 }
  0x41   :  { %201 = vmatprep.subr.bf16.mxu1 %v187_v14  ;;  %v591_v24 = vld [vmem:[#allocation10 + $0x40] ss:$8 sps:$4 sm:$0xff]   ;;  %v592_v25 = vld [vmem:[#allocation10 + $0x34] ss:$8 sps:$4 sm:$0xff]   ;;  %v594_v26 = vld [vmem:[#allocation10 + $0x30] ss:$8 sps:$4 sm:$0xff]  }
  0x42   :  { %527 = vmatmul.mubr.msk.bf16.vlgmr.msra.gmra.mxu1 %vm109_vm2, %v102_v10  ;;  %v595_v27 = vld [vmem:[#allocation10 + $0x24] ss:$8 sps:$4 sm:$0xff]   ;;  %v597_v28 = vld [vmem:[#allocation10 + $0x20] ss:$8 sps:$4 sm:$0xff]   ;;  %v598_v29 = vld [vmem:[#allocation10 + $0x14] ss:$8 sps:$4 sm:$0xff]  }
  0x43   :  { %202 = vmatpush1.bf16.msra.mxu1 %v184_v13  ;;  %221 = vmatprep.mubr.bf16.mxu1 %v741_v0  ;;  %v600_v30 = vld [vmem:[#allocation10 + $0x10] ss:$8 sps:$4 sm:$0xff]   ;;  %v601_v31 = vld [vmem:[#allocation10 + $0x4] ss:$8 sps:$4 sm:$0xff]   ;;  %v603_v32 = vld [vmem:[#allocation10] ss:$8 sps:$4 sm:$0xff]  }
  0x44   :  { %203 = vmatprep.subr.bf16.mxu1 %v579_v16  ;;  %455 = vmatpush1.bf16.msra.mxu0 %v585_v17  ;;  %v604_v33 = vld [vmem:[#allocation10 + $0xf4] ss:$8 sps:$4 sm:$0xff]   ;;  %v606_v34 = vld [vmem:[#allocation10 + $0xf0] ss:$8 sps:$4 sm:$0xff]   ;;  %v607_v35 = vld [vmem:[#allocation10 + $0xe4] ss:$8 sps:$4 sm:$0xff]  }
  0x45   :  { %456 = vmatprep.subr.bf16.mxu0 %v586_v19  ;;  %v609_v36 = vld [vmem:[#allocation10 + $0xe0] ss:$8 sps:$4 sm:$0xff]   ;;  %v610_v37 = vld [vmem:[#allocation10 + $0xd4] ss:$8 sps:$4 sm:$0xff]   ;;  %v612_v38 = vld [vmem:[#allocation10 + $0xd0] ss:$8 sps:$4 sm:$0xff]  }
  0x46   :  { %v613_v39 = vld [vmem:[#allocation10 + $0xc4] ss:$8 sps:$4 sm:$0xff]   ;;  %v615_v40 = vld [vmem:[#allocation10 + $0xc0] ss:$8 sps:$4 sm:$0xff]   ;;  %v616_v41 = vld [vmem:[#allocation10 + $0xb4] ss:$8 sps:$4 sm:$0xff]  }
  0x47   :  { %204 = vmatpush1.bf16.msra.mxu1 %v577_v18  ;;  %v618_v42 = vld [vmem:[#allocation10 + $0xb0] ss:$8 sps:$4 sm:$0xff]   ;;  %v619_v43 = vld [vmem:[#allocation10 + $0xa4] ss:$8 sps:$4 sm:$0xff]   ;;  %v621_v44 = vld [vmem:[#allocation10 + $0xa0] ss:$8 sps:$4 sm:$0xff]  }
  0x48   :  { %457 = vmatpush1.bf16.msra.mxu0 %v588_v21  ;;  %v622_v45 = vld [vmem:[#allocation10 + $0x94] ss:$8 sps:$4 sm:$0xff]   ;;  %v624_v46 = vld [vmem:[#allocation10 + $0x90] ss:$8 sps:$4 sm:$0xff]   ;;  %v625_v47 = vld [vmem:[#allocation10 + $0x84] ss:$8 sps:$4 sm:$0xff]  }
  0x49   :  { %458 = vmatprep.subr.bf16.mxu0 %v589_v23  ;;  %v627_v48 = vld [vmem:[#allocation10 + $0x80] ss:$8 sps:$4 sm:$0xff]   ;;  %v234_v53 = vsub.s32 0, %v233_v50  ;;  %v230_v55 = vld [vmem:[%s826_s4] sm:$0x3]  ;;  %v238_v56 = vsub.s32 1, %v233_v50 }
  0x4a   :  { %532 = vmatmul.mubr.msk.bf16.vlgmr.msra.gmra.mxu1 %vm176_vm3, %v97_v22  ;;  %v280_v8 = vld [vmem:[%s828_s6] sm:$0x3]  ;;  %vm515_vm4 = vcmask 7168  }
  0x4b   :  { %v235_v58 = vrot.slane %v230_v55, %v234_v53  ;;  %v239_v61 = vrot.slane %v230_v55, %v238_v56  ;;  %v285_v9 = vrot.slane %v280_v8, %v234_v53  ;;  %v289_v10 = vrot.slane %v280_v8, %v238_v56  ;;  %v495_v12 = vld [vmem:[%s829_s7] sm:$0x3] }
  0x4c   :  { %459 = vmatpush1.bf16.msra.mxu0 %v591_v24  ;;  %v500_v17 = vrot.slane %v495_v12, %v234_v53  ;;  %v504_v18 = vrot.slane %v495_v12, %v238_v56 }
  0x4d   :  { %460 = vmatprep.subr.bf16.mxu0 %v592_v25  ;;  %v513_v25 = vstv %s830_s8 }
  0x50   :  { %461 = vmatpush1.bf16.msra.mxu0 %v594_v26 }
  0x51   :  { %462 = vmatprep.subr.bf16.mxu0 %v595_v27 }
  0x54   :  { %463 = vmatpush1.bf16.msra.mxu0 %v597_v28 }
  0x55   :  { %464 = vmatprep.subr.bf16.mxu0 %v598_v29 }
  0x58   :  { %465 = vmatpush1.bf16.msra.mxu0 %v600_v30 }
  0x59   :  { %466 = vmatprep.subr.bf16.mxu0 %v601_v31 }
  0x5c   :  { %467 = vmatpush1.bf16.msra.mxu0 %v603_v32 }
  0x5d   :  { %468 = vmatprep.subr.bf16.mxu0 %v604_v33 }
  0x60   :  { %469 = vmatpush2.bf16.msra.mxu0 %v606_v34 }
  0x61   :  { %470 = vmatprep.subr.bf16.mxu0 %v607_v35 }
  0x64   :  { %471 = vmatpush2.bf16.msra.mxu0 %v609_v36 }
  0x65   :  { %472 = vmatprep.subr.bf16.mxu0 %v610_v37 }
  0x68   :  { %473 = vmatpush2.bf16.msra.mxu0 %v612_v38 }
  0x69   :  { %474 = vmatprep.subr.bf16.mxu0 %v613_v39 }
  0x6c   :  { %475 = vmatpush2.bf16.msra.mxu0 %v615_v40 }
  0x6d   :  { %476 = vmatprep.subr.bf16.mxu0 %v616_v41 }
  0x70   :  { %477 = vmatpush2.bf16.msra.mxu0 %v618_v42 }
  0x71   :  { %478 = vmatprep.subr.bf16.mxu0 %v619_v43 }
  0x74   :  { %479 = vmatpush2.bf16.msra.mxu0 %v621_v44 }
  0x75   :  { %480 = vmatprep.subr.bf16.mxu0 %v622_v45 }
  0x78   :  { %481 = vmatpush2.bf16.msra.mxu0 %v624_v46 }
  0x79   :  { %482 = vmatprep.subr.bf16.mxu0 %v625_v47 }
  0x7c   :  { %483 = vmatpush2.bf16.msra.mxu0 %v627_v48 }
 0x102   :  { %v154_v51 = vpop.f32.mrf.mxu1 }
 0x104   :  { %v156_v52 = vpop.f32.mrf.mxu1 }
 0x106   :  { %v158_v54 = vpop.f32.mrf.mxu1 }
 0x108   :  { %v159_v57 = vpop.f32.mrf.mxu1 }
 0x10a   :  { %v223_v59 = vpop.f32.mrf.mxu1 }
 0x10b   :  { %v224_v60 = vadd.f32 %v223_v59, %v154_v51 }
 0x10c   :  { %v225_v62 = vpop.f32.mrf.mxu1 }
 0x10d   :  { %v242_v63 = vadd.f32 %v235_v58, %v224_v60  ;;  %v226_v0 = vadd.f32 %v225_v62, %v156_v52 }
 0x10e   :  { %v227_v1 = vpop.f32.mrf.mxu1 }
 0x10f   :  { %v243_v2 = vadd.f32 %v239_v61, %v226_v0  ;;  %v244_v3 = vmax.f32 %v242_v63, 0.0 }
 0x110   :  { %v228_v4 = vpop.f32.mrf.mxu1 }
 0x111   :  { %v245_v5 = vmax.f32 %v243_v2, 0.0  ;;  %v246_v7 = vpack.c.bf16 %v244_v3, %v244_v3 }
 0x113   :  { %v247_v6 = vpack.c.bf16 %v245_v5, %v245_v5 }
 0x115   :  { %484 = vmatprep.mubr.bf16.mxu0 %v247_v6 }
 0x116   :  { %485 = vmatmul.mubr.bf16.vlgmr.msra.gmra.mxu0 %v246_v7 }
 0x1d6   :  { %v486_v11 = vpop.f32.mrf.mxu0 }
 0x1d7   :  { %v487_v13 = vadd.f32 %v486_v11, %v285_v9 }
 0x1d8   :  { %v488_v14 = vpop.f32.mrf.mxu0 }
 0x1d9   :  { %v493_v15 = vmax.f32 %v487_v13, 0.0  ;;  %v489_v16 = vadd.f32 %v488_v14, %v289_v10 }
 0x1da   :  { %v490_v19 = vpop.f32.mrf.mxu0 }
 0x1db   :  { %v494_v20 = vmax.f32 %v489_v16, 0.0  ;;  %v507_v22 = vmul.f32 %v500_v17, %v493_v15 }
 0x1dc   :  { %v491_v21 = vpop.f32.mrf.mxu0 }
 0x1dd   :  { %v508_v23 = vmul.f32 %v504_v18, %v494_v20 }
 0x1df   :  { %v509_v24 = vadd.f32 %v508_v23, %v507_v22 }
 0x1e1   :  { %510 = vadd.xlane.f32.xlu0 %v509_v24 }
 0x26a   :  { %v511_v26 = vpop.xlane.xlu0 %510 }
 0x26b   :  { %v514_v27 = vadd.f32 %v513_v25, %v511_v26 }
 0x26d   :  { %516 = vst.msk [vmem:[%s831_s9] sm:$0xff] %vm515_vm4, %v514_v27 }
 0x26e   :  { %521 = vsyncpa [#allocation4], 1 }
 0x26f   :  { %522 = vsyncpa [#allocation6], 1 }
 0x270   :  { %523 = vsyncpa [#allocation9], 1 }

</bundles_post_ra>
